<compile_context>
chip_gen: v6e
topology: v6e:2x2x1
jax: 0.10.0
libtpu: 0.0.40
codegen_flags: <defaults>
</compile_context>

<pallas_src>
import functools

import jax
import jax.numpy as jnp
from jax.experimental import pallas as pl
from jax.experimental.pallas import tpu as pltpu


# ---------------------------------------------------------------------------
# Generation-aware VMEM budget and tile selection
# ---------------------------------------------------------------------------
def _round_up(x, m):
    return (x + m - 1) // m * m


def _vmem_capacity_bytes():
    kind = ""
    try:
        kind = jax.devices()[0].device_kind.lower()
    except Exception:
        pass
    if "v7" in kind:
        return 64 * 1024 * 1024            # v7x: 64 MiB VMEM per TensorCore
    if any(tag in kind for tag in ("v5 lite", "v5e", "v5litepod", "v6", "v6e")):
        return 128 * 1024 * 1024           # v5e / v6e: 128 MiB
    return 64 * 1024 * 1024                # unknown: be conservative


def _vmem_limit_bytes():
    cap = _vmem_capacity_bytes()
    return min(int(cap * 3 // 4), 96 * 1024 * 1024)


def _choose_tiles(D, H, A):
    """VMEM-budget-driven (tm, th, Hp) selection from real shapes/dtypes."""
    vmem_limit = _vmem_limit_bytes()
    avail = max(vmem_limit - (6 << 20), 2 << 20)   # headroom for Mosaic scratch

    def usage(tm, th):
        x_b = 2 * tm * D * 2            # bf16 tokens, double-buffered
        w1_b = 2 * D * (2 * th) * 2     # fused [W1a | W1b] block, bf16
        w2_b = 2 * th * D * 2           # W2 block, bf16
        wgt_b = 2 * tm * 1 * 4          # per-row gate weights, f32
        out_b = 2 * tm * D * 4          # f32 output block
        acc_b = tm * D * 4              # resident f32 accumulator
        return x_b + w1_b + w2_b + wgt_b + out_b + acc_b

    # th candidates: whole (padded) H when small, else large tiles with
    # <= 10% padding waste (H is padded to a multiple of th).
    th_cands = []
    hp128 = _round_up(max(H, 8), 128)
    if hp128 <= 512:
        th_cands.append((hp128, hp128))
    for t in (512, 384, 256, 128):
        hp = _round_up(H, t)
        if (hp - H) * 10 <= H and (t, hp) not in th_cands:
            th_cands.append((t, hp))
    if not th_cands:
        th_cands.append((128, hp128))

    tm_cap = max(8, min(1024, _round_up(A, 8)))
    tm_cands = [c for c in (1024, 512, 256, 128, 64, 32, 16, 8) if c <= tm_cap]
    if not tm_cands:
        tm_cands = [8]

    # Pass 1: prefer a large th while keeping a reasonably large token tile.
    for th, hp in th_cands:
        for tm in tm_cands:
            if tm >= 128 and usage(tm, th) <= avail:
                return tm, th, hp, vmem_limit
    # Pass 2: accept any fitting tile size (small-shape / huge-D fallback).
    for th, hp in th_cands:
        for tm in tm_cands:
            if usage(tm, th) <= avail:
                return tm, th, hp, vmem_limit
    return tm_cands[-1], 128, hp128, vmem_limit


# ---------------------------------------------------------------------------
# Pallas kernels
# ---------------------------------------------------------------------------
def _router_kernel(x_ref, wg_ref, s_ref):
    # s = sigmoid(x @ Wg)   (tm, D) @ (D, Np) -> (tm, Np)
    logits = jnp.dot(x_ref[...], wg_ref[...], preferred_element_type=jnp.float32)
    s_ref[...] = jax.nn.sigmoid(logits)


def _moe_grouped_kernel(eo_ref, nv_ref,                 # scalar prefetch (SMEM)
                        x_ref, w1_ref, w2_ref, wgt_ref,  # inputs (VMEM)
                        o_ref, acc_ref):                 # output, scratch
    t = pl.program_id(0)
    h = pl.program_id(1)
    nh = pl.num_programs(1)

    @pl.when(h == 0)
    def _init():
        acc_ref[...] = jnp.zeros_like(acc_ref)

    # Trailing dummy tiles (beyond the used, per-expert-padded range) skip all
    # MXU work; their weight DMA is deduped by the clamped index_maps.
    @pl.when(t < nv_ref[0])
    def _compute():
        th = w2_ref.shape[0]
        x = x_ref[...]                                                       # (tm, D) bf16
        uv = jnp.dot(x, w1_ref[...], preferred_element_type=jnp.float32)     # (tm, 2*th)
        u = uv[:, :th]
        v = uv[:, th:]
        g = (u * jax.nn.sigmoid(u)) * v                                      # SwiGLU, f32
        g = g * wgt_ref[...]                                                 # fold gate weight (tm, 1)
        acc_ref[...] += jnp.dot(g.astype(jnp.bfloat16), w2_ref[...],
                                preferred_element_type=jnp.float32)          # (tm, D)

    @pl.when(h == nh - 1)
    def _finalize():
        o_ref[...] = acc_ref[...].astype(o_ref.dtype)


# ---------------------------------------------------------------------------
# Pallas wrappers
# ---------------------------------------------------------------------------
def _router_scores(x_MD, Wg_DN, vmem_limit):
    M, D = x_MD.shape
    N = Wg_DN.shape[1]
    tmr = min(256, _round_up(M, 8))
    Mp = _round_up(M, tmr)
    Np = _round_up(max(N, 128), 128)                    # lane-dense router output
    x_pad = jnp.zeros((Mp, D), jnp.bfloat16).at[:M].set(x_MD.astype(jnp.bfloat16))
    wg_pad = jnp.zeros((D, Np), jnp.bfloat16).at[:, :N].set(Wg_DN.astype(jnp.bfloat16))
    s = pl.pallas_call(
        _router_kernel,
        out_shape=jax.ShapeDtypeStruct((Mp, Np), jnp.float32),
        grid_spec=pltpu.PrefetchScalarGridSpec(
            num_scalar_prefetch=0,
            grid=(Mp // tmr,),
            in_specs=[pl.BlockSpec((tmr, D), lambda i: (i, 0)),
                      pl.BlockSpec((D, Np), lambda i: (0, 0))],
            out_specs=pl.BlockSpec((tmr, Np), lambda i: (i, 0)),
        ),
        compiler_params=pltpu.CompilerParams(
            dimension_semantics=("parallel",),
            vmem_limit_bytes=vmem_limit,
        ),
    )(x_pad, wg_pad)
    return s[:M, :N]


def _moe_grouped(x_buf, w1_t, w2_t, wgt_buf, expert_of_tile, nvalid,
                 *, tm, th, vmem_limit):
    A_buf, D = x_buf.shape
    Hn = w1_t.shape[1]
    grid = (A_buf // tm, Hn)

    def tok_map(t, h, eo, nv):
        # Clamp dummy trailing tiles to the last valid tile (dedups their DMA).
        return (jnp.where(t < nv[0], t, nv[0] - 1), 0)

    def w_map(t, h, eo, nv):
        valid = t < nv[0]
        te = jnp.where(valid, t, nv[0] - 1)
        he = jnp.where(valid, h, Hn - 1)
        return (eo[te], he, 0, 0)

    return pl.pallas_call(
        _moe_grouped_kernel,
        out_shape=jax.ShapeDtypeStruct((A_buf, D), jnp.float32),
        grid_spec=pltpu.PrefetchScalarGridSpec(
            num_scalar_prefetch=2,               # expert_of_tile, nvalid in SMEM
            grid=grid,
            in_specs=[
                pl.BlockSpec((tm, D), tok_map),
                pl.BlockSpec((pl.Squeezed(), pl.Squeezed(), D, 2 * th), w_map),
                pl.BlockSpec((pl.Squeezed(), pl.Squeezed(), th, D), w_map),
                pl.BlockSpec((tm, 1), tok_map),
            ],
            out_specs=pl.BlockSpec((tm, D), lambda t, h, eo, nv: (t, 0)),
            scratch_shapes=[pltpu.VMEM((tm, D), jnp.float32)],
        ),
        compiler_params=pltpu.CompilerParams(
            dimension_semantics=("parallel", "arbitrary"),
            vmem_limit_bytes=vmem_limit,
        ),
    )(expert_of_tile, nvalid, x_buf, w1_t, w2_t, wgt_buf)


# ---------------------------------------------------------------------------
# Routing + grouped-layout glue (plain JAX)
# ---------------------------------------------------------------------------
def _route(x_MD, Wg_DN, biases_N, K, Ks, vmem_limit):
    """Per-token expert assignments (routed top-k + shared) and gate weights."""
    M, _ = x_MD.shape
    N = Wg_DN.shape[1]
    s_MN = _router_scores(x_MD, Wg_DN, vmem_limit)          # sigmoid gate scores
    k_routed = K - Ks
    biased = s_MN + biases_N[None, :]                        # -inf on shared experts
    _, top_idx = jax.lax.top_k(biased, k_routed)             # (M, k_routed)
    w_routed = jnp.take_along_axis(s_MN, top_idx, axis=1)    # sigmoid weights, no renorm
    shared_idx = jnp.broadcast_to(jnp.arange(N - Ks, N, dtype=jnp.int32), (M, Ks))
    expert_MK = jnp.concatenate([top_idx.astype(jnp.int32), shared_idx], axis=1)
    w_MK = jnp.concatenate(
        [w_routed.astype(jnp.float32), jnp.ones((M, Ks), jnp.float32)], axis=1)
    return expert_MK, w_MK


def _grouped_layout(expert_MK, w_MK, M, N, tm):
    """Sort assignments by expert; pad each group to a multiple of tm."""
    K = expert_MK.shape[1]
    A = M * K
    expert_A = expert_MK.reshape(A)
    token_A = jnp.broadcast_to(
        jnp.arange(M, dtype=jnp.int32)[:, None], (M, K)).reshape(A)
    w_A = w_MK.reshape(A)

    perm = jnp.argsort(expert_A, stable=True)
    sorted_e = expert_A[perm]
    sorted_t = token_A[perm]
    sorted_w = w_A[perm]

    counts = jnp.bincount(expert_A, length=N).astype(jnp.int32)          # (N,)
    offs = jnp.concatenate(
        [jnp.zeros((1,), jnp.int32), jnp.cumsum(counts)]).astype(jnp.int32)
    padded = ((counts + tm - 1) // tm) * tm
    poffs = jnp.concatenate(
        [jnp.zeros((1,), jnp.int32), jnp.cumsum(padded)]).astype(jnp.int32)

    rank = jnp.arange(A, dtype=jnp.int32) - offs[sorted_e]
    pos = poffs[sorted_e] + rank                     # unique padded positions

    A_buf = _round_up(A, tm) + N * tm                # static worst-case buffer
    src_tok = jnp.full((A_buf,), M, jnp.int32).at[pos].set(sorted_t)
    wgt_buf = jnp.zeros((A_buf, 1), jnp.float32).at[pos, 0].set(sorted_w)

    G = A_buf // tm
    tile_start = jnp.arange(G, dtype=jnp.int32) * tm
    expert_of_tile = jnp.clip(
        jnp.searchsorted(poffs[1:], tile_start, side="right"),
        0, N - 1).astype(jnp.int32)
    nvalid = (poffs[N] // tm).astype(jnp.int32)[None]    # (1,) used-tile count

    pos_of_assign = jnp.zeros((A,), jnp.int32).at[perm].set(pos)
    return src_tok, wgt_buf, expert_of_tile, nvalid, pos_of_assign, counts


def _prep_weights(Wl1_ND2H, Wl2_NHD, th, Hp):
    """Fuse W1a/W1b and retile weights into contiguous (expert, h-tile) blocks."""
    N, D, H2 = Wl1_ND2H.shape
    H = H2 // 2
    Hn = Hp // th
    w1a = Wl1_ND2H[:, :, :H]
    w1b = Wl1_ND2H[:, :, H:]
    w2 = Wl2_NHD
    pad = Hp - H
    if pad:
        w1a = jnp.pad(w1a, ((0, 0), (0, 0), (0, pad)))
        w1b = jnp.pad(w1b, ((0, 0), (0, 0), (0, pad)))
        w2 = jnp.pad(w2, ((0, 0), (0, pad), (0, 0)))
    w1a_t = w1a.reshape(N, D, Hn, th).transpose(0, 2, 1, 3)          # (N, Hn, D, th)
    w1b_t = w1b.reshape(N, D, Hn, th).transpose(0, 2, 1, 3)
    w1_t = jnp.concatenate([w1a_t, w1b_t], axis=-1).astype(jnp.bfloat16)  # (N, Hn, D, 2th)
    w2_t = w2.reshape(N, Hn, th, D).astype(jnp.bfloat16)                  # (N, Hn, th, D)
    return w1_t, w2_t


# ---------------------------------------------------------------------------
# Full MoE forward
# ---------------------------------------------------------------------------
@functools.partial(jax.jit, static_argnames=("K", "Ks", "bias_update_rate"))
def moe_forward(x_BSD, Wg_DN, Wl1_ND2H, Wl2_NHD, biases_N, *, K, Ks,
                bias_update_rate=1e-4):
    B, S, D = x_BSD.shape
    N = Wg_DN.shape[1]
    H = Wl2_NHD.shape[1]
    M = B * S
    A = M * K
    tm, th, Hp, vmem_limit = _choose_tiles(D, H, A)

    x_MD = x_BSD.reshape(M, D)

    # --- Router (Pallas GEMM + sigmoid) + top-k selection ---------------------
    expert_MK, w_MK = _route(x_MD, Wg_DN, biases_N, K, Ks, vmem_limit)

    # --- Group assignments by expert; gather tokens into the padded buffer ----
    src_tok, wgt_buf, expert_of_tile, nvalid, pos_of_assign, counts = \
        _grouped_layout(expert_MK, w_MK, M, N, tm)
    x_ext = jnp.concatenate(
        [x_MD.astype(jnp.bfloat16), jnp.zeros((1, D), jnp.bfloat16)], axis=0)
    x_buf = x_ext[src_tok]                                   # (A_buf, D) bf16

    # --- Grouped expert MLPs (Pallas, bf16 MXU / f32 accumulate) --------------
    w1_t, w2_t = _prep_weights(Wl1_ND2H, Wl2_NHD, th, Hp)
    y_buf = _moe_grouped(x_buf, w1_t, w2_t, wgt_buf, expert_of_tile, nvalid,
                         tm=tm, th=th, vmem_limit=vmem_limit)  # (A_buf, D) f32

    # --- Combine: un-sort and sum the K gate-weighted expert outputs ----------
    y_MKD = y_buf[pos_of_assign].reshape(M, K, D)
    y_BSD = y_MKD.sum(axis=1).reshape(B, S, D).astype(x_BSD.dtype)

    # --- Aux-loss-free load-balance bias update (stateful in torch) -----------
    sizes_N = counts.astype(jnp.float32)
    c_avg = B * S * (K - Ks) / (N - Ks)
    new_biases_N = biases_N + bias_update_rate * jnp.sign(c_avg - sizes_N)
    return y_BSD, new_biases_N


@functools.partial(jax.jit, static_argnames=("K", "Ks"))
def route_for_test(x_BSD, Wg_DN, biases_N, *, K, Ks):
    B, S, D = x_BSD.shape
    M = B * S
    return _route(x_BSD.reshape(M, D), Wg_DN, biases_N, K, Ks,
                  _vmem_limit_bytes())


# ---------------------------------------------------------------------------
# Test
# ---------------------------------------------------------------------------
if __name__ == "__main__":
    # Small config consistent with the module's constructor.
    B, S = 2, 8
    D, H = 32, 64        # embedding_dim, intermediate_dim
    N, K, Ks = 8, 3, 1   # num_experts, num_chosen_experts, num_shared_experts
    M = B * S

    key = jax.random.PRNGKey(0)
    kx, kg, k1, k2 = jax.random.split(key, 4)
    x_BSD = jax.random.normal(kx, (B, S, D), dtype=jnp.float32)
    Wg_DN = jax.random.normal(kg, (D, N), dtype=jnp.float32) * 0.05
    Wl1_ND2H = jax.random.normal(k1, (N, D, 2 * H), dtype=jnp.float32) * 0.05
    Wl2_NHD = jax.random.normal(k2, (N, H, D), dtype=jnp.float32) * 0.05
    biases_N = jnp.concatenate(
        [jnp.zeros((N - Ks,), jnp.float32),
         jnp.full((Ks,), -jnp.inf, jnp.float32)])

    y_BSD, new_biases_N = moe_forward(
        x_BSD, Wg_DN, Wl1_ND2H, Wl2_NHD, biases_N, K=K, Ks=Ks)
    y_BSD = jax.block_until_ready(y_BSD)
    new_biases_N = jax.block_until_ready(new_biases_N)
    assert y_BSD.shape == (B, S, D)
    assert bool(jnp.all(jnp.isfinite(y_BSD)))

    # Reference: dense per-expert MLP in plain JAX, combined with the SAME
    # routing (expert ids + gate weights) the Pallas path used, with matching
    # bf16 quantization of activations / weights.
    expert_MK, w_MK = route_for_test(x_BSD, Wg_DN, biases_N, K=K, Ks=Ks)
    q = lambda a: a.astype(jnp.bfloat16).astype(jnp.float32)
    xq = q(x_BSD.reshape(M, D))
    u = jnp.einsum("md,ndh->nmh", xq, q(Wl1_ND2H[:, :, :H]))
    v = jnp.einsum("md,ndh->nmh", xq, q(Wl1_ND2H[:, :, H:]))
    y_all = jnp.einsum("nmh,nhd->nmd", jax.nn.silu(u) * v, q(Wl2_NHD))   # (N, M, D)
    w_dense = jnp.zeros((M, N), jnp.float32).at[
        jnp.arange(M)[:, None], expert_MK].add(w_MK)                     # (M, N)
    y_ref = jnp.einsum("mn,nmd->md", w_dense, y_all).reshape(B, S, D)

    assert jnp.allclose(y_BSD.astype(jnp.float32), y_ref,
                        rtol=2e-2, atol=2e-2), "mismatch vs reference"
    print("KERNEL_OK")
</pallas_src>

<mosaic_0001>
module attributes {stable_mosaic.version = 11 : i64} {
  func.func private @main(%arg0: i32) attributes {dimension_semantics = [#tpu.dimension_semantics<core_parallel>], iteration_bounds = array<i64: 2>, tpu.core_type = #tpu.core_type<sc_scalar_subcore>, window_params = []} {
    return
  }
}

module attributes {stable_mosaic.version = 11 : i64} {
  func.func private @main(%arg0: i32) attributes {dimension_semantics = [#tpu.dimension_semantics<core_parallel>], iteration_bounds = array<i64: 2>, tpu.core_type = #tpu.core_type<sc_scalar_subcore>, window_params = []} {
    return
  }
}

module attributes {stable_mosaic.version = 11 : i64} {
  func.func @_router_kernel(%arg0: i32, %arg1: memref<16x32xbf16, #tpu.memory_space<vmem>>, %arg2: memref<32x128xbf16, #tpu.memory_space<vmem>>, %arg3: memref<16x128xf32, #tpu.memory_space<vmem>>) attributes {dimension_semantics = [#tpu.dimension_semantics<parallel>], iteration_bounds = array<i64: 1>, scalar_prefetch = 0 : i64, scratch_operands = 0 : i64, tpu.core_type = #tpu.core_type<tc>, window_params = [{transform_indices = @transform_0, window_bounds = array<i64: 16, 32>}, {pipeline_mode = #tpu.pipeline_mode<synchronous>, transform_indices = @transform_1, window_bounds = array<i64: 32, 128>}, {transform_indices = @transform_2, window_bounds = array<i64: 16, 128>}]} {
    %c0 = arith.constant 0 : index
    %c0_0 = arith.constant 0 : index
    %0 = vector.load %arg1[%c0, %c0_0] : memref<16x32xbf16, #tpu.memory_space<vmem>>, vector<16x32xbf16>
    %c0_1 = arith.constant 0 : index
    %c0_2 = arith.constant 0 : index
    %1 = vector.load %arg2[%c0_1, %c0_2] : memref<32x128xbf16, #tpu.memory_space<vmem>>, vector<32x128xbf16>
    %cst = arith.constant dense<0.000000e+00> : vector<16x128xf32>
    %2 = tpu.matmul %0, %1, %cst {dimension_numbers = #tpu.dot_dimension_numbers<[1], [0], [0], [1], [0, 0, 1, 1], [], []>} : vector<16x32xbf16>, vector<32x128xbf16>, vector<16x128xf32> -> vector<16x128xf32>
    %3 = arith.negf %2 : vector<16x128xf32>
    %4 = math.exp %3 : vector<16x128xf32>
    %cst_3 = arith.constant 1.000000e+00 : f32
    %5 = vector.broadcast %cst_3 : f32 to vector<16x128xf32>
    %6 = arith.addf %5, %4 : vector<16x128xf32>
    %7 = arith.divf %5, %6 : vector<16x128xf32>
    %c0_4 = arith.constant 0 : index
    %c0_5 = arith.constant 0 : index
    %8 = vector.load %arg3[%c0_4, %c0_5] : memref<16x128xf32, #tpu.memory_space<vmem>>, vector<16x128xf32>
    tpu.vector_store %arg3[%c0_4, %c0_5], %7 {strides = array<i32>} : memref<16x128xf32, #tpu.memory_space<vmem>>, vector<16x128xf32>,
    return
  }
  func.func @transform_0(%arg0: i32) -> (i32, i32) {
    %c0_i32 = arith.constant 0 : i32
    %c0_i32_0 = arith.constant 0 : i32
    return %arg0, %c0_i32 : i32, i32
  }
  func.func @transform_1(%arg0: i32) -> (i32, i32) {
    %c0_i32 = arith.constant 0 : i32
    %c0_i32_0 = arith.constant 0 : i32
    %c0_i32_1 = arith.constant 0 : i32
    return %c0_i32, %c0_i32_0 : i32, i32
  }
  func.func @transform_2(%arg0: i32) -> (i32, i32) {
    %c0_i32 = arith.constant 0 : i32
    %c0_i32_0 = arith.constant 0 : i32
    return %arg0, %c0_i32 : i32, i32
  }
}

module attributes {stable_mosaic.version = 11 : i64} {
  func.func @_moe_grouped_kernel(%arg0: i32, %arg1: i32, %arg2: memref<10xi32, #tpu.memory_space<smem>>, %arg3: memref<1xi32, #tpu.memory_space<smem>>, %arg4: memref<32x32xbf16, #tpu.memory_space<vmem>>, %arg5: memref<1x1x32x256xbf16, #tpu.memory_space<vmem>>, %arg6: memref<1x1x128x32xbf16, #tpu.memory_space<vmem>>, %arg7: memref<32x1xf32, #tpu.memory_space<vmem>>, %arg8: memref<32x32xf32, #tpu.memory_space<vmem>>, %arg9: memref<32x32xf32, #tpu.memory_space<vmem>>) attributes {dimension_semantics = [#tpu.dimension_semantics<parallel>, #tpu.dimension_semantics<arbitrary>], iteration_bounds = array<i64: 10, 1>, scalar_prefetch = 2 : i64, scratch_operands = 1 : i64, tpu.core_type = #tpu.core_type<tc>, window_params = [{transform_indices = @transform_0, window_bounds = array<i64: 32, 32>}, {transform_indices = @transform_1, window_bounds = array<i64: 1, 1, 32, 256>}, {transform_indices = @transform_2, window_bounds = array<i64: 1, 1, 128, 32>}, {transform_indices = @transform_3, window_bounds = array<i64: 32, 1>}, {transform_indices = @transform_4, window_bounds = array<i64: 32, 32>}]} {
    %c0_i32 = arith.constant 0 : i32
    %0 = arith.cmpi eq, %arg1, %c0_i32 : i32
    %1 = arith.extui %0 : i1 to i32
    %c0_i32_0 = arith.constant 0 : i32
    %2 = arith.cmpi ne, %1, %c0_i32_0 : i32
    scf.if %2 {
      %cst = arith.constant 0.000000e+00 : f32
      %10 = vector.broadcast %cst : f32 to vector<32x32xf32>
      %c0_4 = arith.constant 0 : index
      %c0_5 = arith.constant 0 : index
      %11 = vector.load %arg9[%c0_4, %c0_5] : memref<32x32xf32, #tpu.memory_space<vmem>>, vector<32x32xf32>
      tpu.vector_store %arg9[%c0_4, %c0_5], %10 {strides = array<i32>} : memref<32x32xf32, #tpu.memory_space<vmem>>, vector<32x32xf32>,
    } else {
    }
    %c0 = arith.constant 0 : index
    %3 = memref.load %arg3[%c0] : memref<1xi32, #tpu.memory_space<smem>>
    %4 = arith.cmpi slt, %arg0, %3 : i32
    %5 = arith.extui %4 : i1 to i32
    %c0_i32_1 = arith.constant 0 : i32
    %6 = arith.cmpi ne, %5, %c0_i32_1 : i32
    scf.if %6 {
      %c0_4 = arith.constant 0 : index
      %c0_5 = arith.constant 0 : index
      %10 = vector.load %arg4[%c0_4, %c0_5] : memref<32x32xbf16, #tpu.memory_space<vmem>>, vector<32x32xbf16>
      %c0_6 = arith.constant 0 : index
      %c0_7 = arith.constant 0 : index
      %c0_8 = arith.constant 0 : index
      %c0_9 = arith.constant 0 : index
      %11 = vector.load %arg5[%c0_6, %c0_7, %c0_8, %c0_9] : memref<1x1x32x256xbf16, #tpu.memory_space<vmem>>, vector<1x1x32x256xbf16>
      %12 = vector.shape_cast %11 : vector<1x1x32x256xbf16> to vector<32x256xbf16>
      %cst = arith.constant dense<0.000000e+00> : vector<32x256xf32>
      %13 = tpu.matmul %10, %12, %cst {dimension_numbers = #tpu.dot_dimension_numbers<[1], [0], [0], [1], [0, 0, 1, 1], [], []>} : vector<32x32xbf16>, vector<32x256xbf16>, vector<32x256xf32> -> vector<32x256xf32>
      %14 = vector.extract_strided_slice %13 {offsets = [0, 0], sizes = [32, 128], strides = [1, 1]} : vector<32x256xf32> to vector<32x128xf32>
      %15 = vector.extract_strided_slice %13 {offsets = [0, 128], sizes = [32, 128], strides = [1, 1]} : vector<32x256xf32> to vector<32x128xf32>
      %16 = arith.negf %14 : vector<32x128xf32>
      %17 = math.exp %16 : vector<32x128xf32>
      %cst_10 = arith.constant 1.000000e+00 : f32
      %18 = vector.broadcast %cst_10 : f32 to vector<32x128xf32>
      %19 = arith.addf %18, %17 : vector<32x128xf32>
      %20 = arith.divf %18, %19 : vector<32x128xf32>
      %21 = arith.mulf %14, %20 : vector<32x128xf32>
      %22 = arith.mulf %21, %15 : vector<32x128xf32>
      %c0_11 = arith.constant 0 : index
      %c0_12 = arith.constant 0 : index
      %23 = vector.load %arg7[%c0_11, %c0_12] : memref<32x1xf32, #tpu.memory_space<vmem>>, vector<32x1xf32>
      %24 = vector.broadcast %23 : vector<32x1xf32> to vector<32x128xf32>
      %25 = arith.mulf %22, %24 : vector<32x128xf32>
      %c0_13 = arith.constant 0 : index
      %c0_14 = arith.constant 0 : index
      %26 = vector.load %arg9[%c0_13, %c0_14] : memref<32x32xf32, #tpu.memory_space<vmem>>, vector<32x32xf32>
      %27 = arith.truncf %25 : vector<32x128xf32> to vector<32x128xbf16>
      %c0_15 = arith.constant 0 : index
      %c0_16 = arith.constant 0 : index
      %c0_17 = arith.constant 0 : index
      %c0_18 = arith.constant 0 : index
      %28 = vector.load %arg6[%c0_15, %c0_16, %c0_17, %c0_18] : memref<1x1x128x32xbf16, #tpu.memory_space<vmem>>, vector<1x1x128x32xbf16>
      %29 = vector.shape_cast %28 : vector<1x1x128x32xbf16> to vector<128x32xbf16>
      %cst_19 = arith.constant dense<0.000000e+00> : vector<32x32xf32>
      %30 = tpu.matmul %27, %29, %cst_19 {dimension_numbers = #tpu.dot_dimension_numbers<[1], [0], [0], [1], [0, 0, 1, 1], [], []>} : vector<32x128xbf16>, vector<128x32xbf16>, vector<32x32xf32> -> vector<32x32xf32>
      %31 = arith.addf %26, %30 : vector<32x32xf32>
      %c0_20 = arith.constant 0 : index
      %c0_21 = arith.constant 0 : index
      %32 = vector.load %arg9[%c0_20, %c0_21] : memref<32x32xf32, #tpu.memory_space<vmem>>, vector<32x32xf32>
      tpu.vector_store %arg9[%c0_20, %c0_21], %31 {strides = array<i32>} : memref<32x32xf32, #tpu.memory_space<vmem>>, vector<32x32xf32>,
    } else {
    }
    %c0_i32_2 = arith.constant 0 : i32
    %7 = arith.cmpi eq, %arg1, %c0_i32_2 : i32
    %8 = arith.extui %7 : i1 to i32
    %c0_i32_3 = arith.constant 0 : i32
    %9 = arith.cmpi ne, %8, %c0_i32_3 : i32
    scf.if %9 {
      %c0_4 = arith.constant 0 : index
      %c0_5 = arith.constant 0 : index
      %10 = vector.load %arg9[%c0_4, %c0_5] : memref<32x32xf32, #tpu.memory_space<vmem>>, vector<32x32xf32>
      %c0_6 = arith.constant 0 : index
      %c0_7 = arith.constant 0 : index
      %11 = vector.load %arg8[%c0_6, %c0_7] : memref<32x32xf32, #tpu.memory_space<vmem>>, vector<32x32xf32>
      tpu.vector_store %arg8[%c0_6, %c0_7], %10 {strides = array<i32>} : memref<32x32xf32, #tpu.memory_space<vmem>>, vector<32x32xf32>,
    } else {
    }
    return
  }
  func.func @transform_0(%arg0: i32, %arg1: i32, %arg2: memref<10xi32, #tpu.memory_space<smem>>, %arg3: memref<1xi32, #tpu.memory_space<smem>>) -> (i32, i32) {
    %c0 = arith.constant 0 : index
    %0 = memref.load %arg3[%c0] : memref<1xi32, #tpu.memory_space<smem>>
    %1 = arith.cmpi slt, %arg0, %0 : i32
    %c0_0 = arith.constant 0 : index
    %2 = memref.load %arg3[%c0_0] : memref<1xi32, #tpu.memory_space<smem>>
    %c1_i32 = arith.constant 1 : i32
    %3 = arith.subi %2, %c1_i32 : i32
    %4 = arith.select %1, %arg0, %3 : i32
    %c0_i32 = arith.constant 0 : i32
    %c0_i32_1 = arith.constant 0 : i32
    return %4, %c0_i32 : i32, i32
  }
  func.func @transform_1(%arg0: i32, %arg1: i32, %arg2: memref<10xi32, #tpu.memory_space<smem>>, %arg3: memref<1xi32, #tpu.memory_space<smem>>) -> (i32, i32, i32, i32) {
    %c0 = arith.constant 0 : index
    %0 = memref.load %arg3[%c0] : memref<1xi32, #tpu.memory_space<smem>>
    %1 = arith.cmpi slt, %arg0, %0 : i32
    %c0_0 = arith.constant 0 : index
    %2 = memref.load %arg3[%c0_0] : memref<1xi32, #tpu.memory_space<smem>>
    %c1_i32 = arith.constant 1 : i32
    %3 = arith.subi %2, %c1_i32 : i32
    %4 = arith.select %1, %arg0, %3 : i32
    %c0_i32 = arith.constant 0 : i32
    %5 = arith.select %1, %arg1, %c0_i32 : i32
    %6 = arith.index_cast %4 : i32 to index
    %7 = memref.load %arg2[%6] : memref<10xi32, #tpu.memory_space<smem>>
    %c0_i32_1 = arith.constant 0 : i32
    %c0_i32_2 = arith.constant 0 : i32
    %c0_i32_3 = arith.constant 0 : i32
    return %7, %5, %c0_i32_1, %c0_i32_2 : i32, i32, i32, i32
  }
  func.func @transform_2(%arg0: i32, %arg1: i32, %arg2: memref<10xi32, #tpu.memory_space<smem>>, %arg3: memref<1xi32, #tpu.memory_space<smem>>) -> (i32, i32, i32, i32) {
    %c0 = arith.constant 0 : index
    %0 = memref.load %arg3[%c0] : memref<1xi32, #tpu.memory_space<smem>>
    %1 = arith.cmpi slt, %arg0, %0 : i32
    %c0_0 = arith.constant 0 : index
    %2 = memref.load %arg3[%c0_0] : memref<1xi32, #tpu.memory_space<smem>>
    %c1_i32 = arith.constant 1 : i32
    %3 = arith.subi %2, %c1_i32 : i32
    %4 = arith.select %1, %arg0, %3 : i32
    %c0_i32 = arith.constant 0 : i32
    %5 = arith.select %1, %arg1, %c0_i32 : i32
    %6 = arith.index_cast %4 : i32 to index
    %7 = memref.load %arg2[%6] : memref<10xi32, #tpu.memory_space<smem>>
    %c0_i32_1 = arith.constant 0 : i32
    %c0_i32_2 = arith.constant 0 : i32
    %c0_i32_3 = arith.constant 0 : i32
    return %7, %5, %c0_i32_1, %c0_i32_2 : i32, i32, i32, i32
  }
  func.func @transform_3(%arg0: i32, %arg1: i32, %arg2: memref<10xi32, #tpu.memory_space<smem>>, %arg3: memref<1xi32, #tpu.memory_space<smem>>) -> (i32, i32) {
    %c0 = arith.constant 0 : index
    %0 = memref.load %arg3[%c0] : memref<1xi32, #tpu.memory_space<smem>>
    %1 = arith.cmpi slt, %arg0, %0 : i32
    %c0_0 = arith.constant 0 : index
    %2 = memref.load %arg3[%c0_0] : memref<1xi32, #tpu.memory_space<smem>>
    %c1_i32 = arith.constant 1 : i32
    %3 = arith.subi %2, %c1_i32 : i32
    %4 = arith.select %1, %arg0, %3 : i32
    %c0_i32 = arith.constant 0 : i32
    %c0_i32_1 = arith.constant 0 : i32
    return %4, %c0_i32 : i32, i32
  }
  func.func @transform_4(%arg0: i32, %arg1: i32, %arg2: memref<10xi32, #tpu.memory_space<smem>>, %arg3: memref<1xi32, #tpu.memory_space<smem>>) -> (i32, i32) {
    %c0_i32 = arith.constant 0 : i32
    %c0_i32_0 = arith.constant 0 : i32
    return %arg0, %c0_i32 : i32, i32
  }
}

</mosaic_0001>

<bundles_post_ra>
// kernel: custom-call.2
= control target key start
LH: loop header
LB: loop body
LE: loop exit
PB: predicated region body
PF: predicated region fallthrough
CT: control target
= control target key end

     0   :  { %s6_s0 = inlined_call_operand.vmem [shape: u32[10], index: 0, kind: output, shape index: {}]  }

// kernel: moe_forward.2
= control target key start
LH: loop header
LB: loop body
LE: loop exit
PB: predicated region body
PF: predicated region fallthrough
CT: control target
= control target key end

     0   :  { %v128_v0 = vmov 0.0   ;;  %vm129_vm0 = vmmov 0   ;;  %vm35_vm1 = vcmask 261120   ;;  %s160_s1 = inlined_call_operand.vmem [shape: bf16[32,128], index: 1, kind: input, shape index: {}]   ;;  %s161_s0 = inlined_call_operand.vmem [shape: bf16[16,32], index: 0, kind: input, shape index: {}]   ;;  %s162_s2 = inlined_call_operand.vmem [shape: f32[16,128], index: 2, kind: output, shape index: {}]  }
   0x1   :  { %107 = vmatprep.subr.bf16.mxu0 %v128_v0  ;;  %v117_v1 = vld [vmem:[%s160_s1 + $0x8] sm:$0xff]   ;;  %111 = vmatprep.mubr.msk.bf16.mxu0 %vm129_vm0, %v128_v0  ;;  %v118_v2 = vld [vmem:[%s160_s1] sm:$0xff]  }
   0x2   :  { %108 = vmatpush3.bf16.msra.mxu0 %v117_v1  ;;  %v119_v3 = vld [vmem:[%s161_s0] sm:$0xff]  }
   0x3   :  { %109 = vmatprep.subr.bf16.mxu0 %v128_v0 }
   0x6   :  { %110 = vmatpush3.bf16.msra.mxu0 %v118_v2 }
   0x9   :  { %112 = vmatmul.mubr.msk.bf16.vlgmr.msra.gmra.mxu0 %vm35_vm1, %v119_v3 }
  0xc9   :  { %v73_v4 = vpop.f32.mrf.mxu0 }
  0xca   :  { %v102_v5 = vmul.f32 -1.442695, %v73_v4 }
  0xcb   :  { %v113_v6 = vpop.f32.mrf.mxu0 }
  0xcc   :  { %120 = vpow2.f32 %v102_v5 }
  0xcd   :  { %v76_v7 = vpop.f32.mrf.mxu0 }
  0xce   :  { %v103_v8 = vmul.f32 -1.442695, %v76_v7 }
  0xcf   :  { %v114_v9 = vpop.f32.mrf.mxu0 }
  0xd0   :  { %122 = vpow2.f32 %v103_v8 }
  0xd9   :  { %v121_v10 = vpop.eup %120 }
  0xda   :  { %v86_v11 = vadd.f32 1.0, %v121_v10 }
  0xdc   :  { %124 = vrcp.f32 %v86_v11 }
  0xdd   :  { %v123_v12 = vpop.eup %122 }
  0xde   :  { %v87_v13 = vadd.f32 1.0, %v123_v12 }
  0xe0   :  { %126 = vrcp.f32 %v87_v13 }
  0xe9   :  { %v125_v14 = vpop.eup %124 }
  0xea   :  { %92 = vst [vmem:[%s162_s2] sm:$0xff] %v125_v14 }
  0xed   :  { %v127_v15 = vpop.eup %126 }
  0xee   :  { %93 = vst [vmem:[%s162_s2 + $0x8] sm:$0xff] %v127_v15 }

// kernel: moe_forward.3
= control target key start
LH: loop header
LB: loop body
LE: loop exit
PB: predicated region body
PF: predicated region fallthrough
CT: control target
= control target key end

     0   :  { %s1195_s0 = inlined_call_operand.vmem [shape: s32[10], index: 0, kind: input, shape index: {}]   ;;  %s1196_s1 = inlined_call_operand.<no memory space> [shape: s32[1], index: 1, kind: input, shape index: {}]   ;;  %s1197_s2 = inlined_call_operand.vmem [shape: bf16[320,32], index: 2, kind: input, shape index: {}]   ;;  %s1198_s3 = inlined_call_operand.vmem [shape: bf16[8,1,32,256], index: 3, kind: input, shape index: {}]   ;;  %s1199_s4 = inlined_call_operand.vmem [shape: bf16[8,1,128,32], index: 4, kind: input, shape index: {}]   ;;  %s1200_s5 = inlined_call_operand.vmem [shape: f32[320,1], index: 5, kind: input, shape index: {}]   ;;  %s1201_s6 = inlined_call_operand.vmem [shape: f32[320,32], index: 6, kind: output, shape index: {}]  }
   0x1   :  { %s11_s23 = sshll.u32 %s1195_s0, 4  ;;  %15 = sst [smem:[#allocation5]] %s1196_s1  ;;  %s12_s23 = int_to_ptr.vmem [resolvable:$true] %s11_s23 }
   0x2   :  { %s1026_s26 = scalar_lea.vmem %s12_s23, 16  ;;  %p1031_p1 = scmp.lt.s32.totalorder %s12_s23, %s12_s23 }
   0x3   :  { %p1027_p0 = scmp.ne.s32.totalorder %s12_s23, %s1026_s26  ;;  %p1032_p2 = scmp.lt.s32.totalorder %s1026_s26, %s1026_s26 }
   0x5   :  { %p1033_p3 = por %p1032_p2, %p1031_p1 }
   0x7   :  { %p1034_p4 = pnand %p1033_p3, %p1027_p0 }
   0x9   :  { %1037 = shalt.err (!%p1034_p4)  }
   0xa   :  { %s1064_s27 = smov [#allocation4]  }
   0xb   :  { %14 = dma.vmem_to_smem %s12_s23, 16, %s1064_s27, [#allocation3] }
   0xc   :  { %1050 = dma.done.wait [#allocation3], 16 }
   0xd   :  { %1051 = vsyncadd [#allocation3], 4294967280 }
   0xe   :  { %17 = sfence }
   0xf   :  { %s1108_s28 = smov 0   ;;  %s1110_s0 = smov 0  }
  0x10   :  { %s1112_s29 = smov 0  }
  0x11 LB: > { %s35_s1 = sadd.s32 1, %s1058_s0  ;;  %p895_p5 = scmp.ge.s32.totalorder %s1062_s29, 1  ;;  %s1062_s29 = sphi %s1112_s29, %s23_s29   ;;  %s1058_s0 = sphi %s1110_s0, %s1203_s0   ;;  %s1054_s28 = sphi %s1108_s28, %s1202_s28  }
  0x12   : > { %p37_p6 = scmp.ge.s32.totalorder %s35_s1, 10  ;;  %p307_p7 = scmp.lt.s32.totalorder %s1062_s29, 11 }
  0x14   : > { %s1205_s1 = smov (%p37_p6, %s35_s1), 0  ;;  %p308_p8 = pnand %p895_p5, %p307_p7 }
  0x15   : > { %s1128_s30 = sld [smem:[#allocation5]] (!%p308_p8)  ;;  %s908_s7 = sshll.u32 (!%p308_p8), %s1054_s28, 2 }
  0x16   : > { %311 = sbr.rel (%p308_p8) target bundleno = 509 (0x1fd), region = 36  ;;  %p447_p9 = scmp.lt.s32.totalorder (!%p308_p8), %s908_s7, 39 }
  0x1b   : > { %vm457_vm0 = vcmask 261120   ;;  %v1065_v0 = vmov 0.0   ;;  %s1207_s7 = smov (!%p447_p9, %s908_s7), 39  ;;  %p377_p10 = scmp.lt.s32.totalorder %s1054_s28, %s1128_s30 }
  0x1c   : > { %458 = vst.msk [vmem:[#allocation2] sm:$0xff] %vm457_vm0, %v1065_v0  ;;  %459 = vst.msk [vmem:[#allocation2 + $0x8] sm:$0xff] %vm457_vm0, %v1065_v0  ;;  %s909_s8 = sshll.u32 %s1207_s7, 3  ;;  %s896_s9 = sadd.s32 4294967295, %s1128_s30 }
  0x1d   : > { %460 = vst.msk [vmem:[#allocation2 + $0x10] sm:$0xff] %vm457_vm0, %v1065_v0  ;;  %461 = vst.msk [vmem:[#allocation2 + $0x18] sm:$0xff] %vm457_vm0, %v1065_v0  ;;  %s1141_s12 = scalar_lea.vmem %s1201_s6, %s909_s8  ;;  %p910_p0 = scmp.ge.s32.totalorder %s1054_s28, %s1128_s30 }
  0x1e   : > { %s379_s13 = scalar_select %p377_p10, %s1054_s28, %s896_s9 }
  0x20   : > { %s897_s14 = sshll.u32 %s379_s13, 2  ;;  %s395_s15 = sld [smem:[#allocation4 + %s379_s13]] }
  0x21   : > { %p381_p11 = scmp.lt.s32.totalorder %s897_s14, 39  ;;  %s416_s16 = sld [smem:[#allocation4 + %s379_s13]] }
  0x23   : > { %s1209_s14 = smov (!%p381_p11, %s897_s14), 39 }
  0x24   : > { %s898_s17 = sshll.u32 %s1209_s14, 2  ;;  %s907_s18 = sshll.u32 %s1209_s14, 3 }
  0x25   : > { %s1147_s21 = scalar_lea.vmem %s1197_s2, %s898_s17  ;;  %s440_s24 = scalar_lea.vmem %s1200_s5, %s907_s18 }
  0x26   : > { %p396_p12 = scmp.lt.s32.totalorder %s395_s15, 7 }
  0x27   : > { %p417_p13 = scmp.lt.s32.totalorder %s416_s16, 7  ;;  %466 = sbr.rel (%p910_p0) target bundleno = 501 (0x1f5), region = 44 }
  0x28   : > { %s1211_s15 = smov (!%p396_p12, %s395_s15), 7 }
  0x29   : > { %s1213_s16 = smov (!%p417_p13, %s416_s16), 7  ;;  %s933_s25 = sshll.u32 %s1211_s15, 5 }
  0x2a   : > { %s404_s7 = scalar_lea.vmem %s1198_s3, %s933_s25  ;;  %s934_s8 = sshll.u32 %s1213_s16, 6 }
  0x2b   : > { %s1158_s11 = scalar_lea.vmem %s1199_s4, %s934_s8 }
  0x2c   : > { %v994_v1 = vld [vmem:[%s404_s7 + $0x14] ss:$8 sps:$4 sm:$0xff]   ;;  %v996_v2 = vld [vmem:[%s404_s7 + $0x10] ss:$8 sps:$4 sm:$0xff]   ;;  %v1066_v3 = vmov 0   ;;  %v1000_v6 = vld [vmem:[%s1147_s21] sm:$0xff]  }
  0x2d   : > { %544 = vmatprep.mubr.bf16.mxu0 %v1066_v3  ;;  %992 = vset.pattern.permute.xlu0 %v1066_v3  ;;  %v997_v4 = vld [vmem:[%s404_s7 + $0x4] ss:$8 sps:$4 sm:$0xff]   ;;  %v999_v5 = vld [vmem:[%s404_s7] ss:$8 sps:$4 sm:$0xff]   ;;  %v599_v8 = vld [vmem:[%s440_s24 + $0x10] sm:$0xff] }
  0x2e   : > { %524 = vmatprep.subr.bf16.mxu0 %v994_v1  ;;  %993 = vset.pattern.permute.xlu1 %v1066_v3  ;;  %v597_v7 = vld [vmem:[%s440_s24] sm:$0xff]  ;;  %v598_v9 = vld [vmem:[%s440_s24 + $0x8] sm:$0xff]  ;;  %v600_v10 = vld [vmem:[%s440_s24 + $0x18] sm:$0xff] }
  0x2f   : > { %525 = vmatpush1.bf16.msra.mxu0 %v996_v2  ;;  %603 = vperm.xlu0 %992, %v597_v7   ;;  %v1001_v11 = vld [vmem:[%s1147_s21 + $0x8] sm:$0xff]   ;;  %v1002_v12 = vld [vmem:[%s1158_s11 + $0x38] sm:$0xff]   ;;  %v1003_v13 = vld [vmem:[%s1158_s11 + $0x30] sm:$0xff]  }
  0x30   : > { %526 = vmatprep.subr.bf16.mxu0 %v997_v4  ;;  %613 = vperm.xlu1 %993, %v599_v8   ;;  %v1004_v14 = vld [vmem:[%s1158_s11 + $0x28] sm:$0xff]   ;;  %v1005_v15 = vld [vmem:[%s1158_s11 + $0x20] sm:$0xff]   ;;  %v1006_v16 = vld [vmem:[%s1158_s11 + $0x18] sm:$0xff]  }
  0x31   : > { %945 = vmatprep.subr.bf16.mxu1 %v1002_v12  ;;  %v1007_v17 = vld [vmem:[%s1158_s11 + $0x10] sm:$0xff]   ;;  %v1008_v18 = vld [vmem:[%s1158_s11 + $0x8] sm:$0xff]   ;;  %v1009_v19 = vld [vmem:[%s1158_s11] sm:$0xff]  }
  0x32   : > { %946 = vmatpush3.bf16.msra.mxu1 %v1002_v12  ;;  %v627_v62 = vld [vmem:[#allocation2 + $0x10] sm:$0xff]  ;;  %v625_v0 = vld [vmem:[#allocation2] sm:$0xff] }
  0x33   : > { %527 = vmatpush1.bf16.msra.mxu0 %v999_v5  ;;  %608 = vperm.xlu0 %992, %v598_v9  }
  0x34   : > { %618 = vperm.xlu1 %993, %v600_v10   ;;  %947 = vmatprep.subr.bf16.mxu1 %v1003_v13 }
  0x36   : > { %917 = vmatmul.mubr.msk.bf16.vlgmr.msra.gmra.mxu0 %vm457_vm0, %v1000_v6  ;;  %948 = vmatpush3.bf16.msra.mxu1 %v1003_v13  ;;  %v626_v6 = vld [vmem:[#allocation2 + $0x8] sm:$0xff] }
  0x37   : > { %554 = vmatprep.mubr.bf16.mxu0 %v1066_v3  ;;  %949 = vmatprep.subr.bf16.mxu1 %v1004_v14  ;;  %v628_v3 = vld [vmem:[#allocation2 + $0x18] sm:$0xff] }
  0x3a   : > { %950 = vmatpush3.bf16.msra.mxu1 %v1004_v14 }
  0x3b   : > { %951 = vmatprep.subr.bf16.mxu1 %v1005_v15 }
  0x3e   : > { %918 = vmatmul.mubr.msk.bf16.gmra.mxu0 %vm457_vm0, %v1001_v11  ;;  %952 = vmatpush3.bf16.msra.mxu1 %v1005_v15 }
  0x3f   : > { %953 = vmatprep.subr.bf16.mxu1 %v1006_v16 }
  0x42   : > { %954 = vmatpush3.bf16.msra.mxu1 %v1006_v16 }
  0x43   : > { %955 = vmatprep.subr.bf16.mxu1 %v1007_v17 }
  0x46   : > { %956 = vmatpush3.bf16.msra.mxu1 %v1007_v17 }
  0x47   : > { %957 = vmatprep.subr.bf16.mxu1 %v1008_v18 }
  0x4a   : > { %958 = vmatpush3.bf16.msra.mxu1 %v1008_v18 }
  0x4b   : > { %959 = vmatprep.subr.bf16.mxu1 %v1009_v19 }
  0x4e   : > { %960 = vmatpush3.bf16.msra.mxu1 %v1009_v19 }
  0xaa   : > { %v604_v40 = vpop.permute.xlu0 %603 }
  0xab   : > { %v614_v51 = vpop.permute.xlu1 %613 }
  0xae   : > { %v609_v45 = vpop.permute.xlu0 %608 }
  0xaf   : > { %v619_v58 = vpop.permute.xlu1 %618 }
  0xf6   : > { %v546_v20 = vpop.f32.mrf.mxu0 }
  0xf7   : > { %v919_v21 = vmul.f32 -1.442695, %v546_v20 }
  0xf8   : > { %v548_v22 = vpop.f32.mrf.mxu0 }
  0xf9   : > { %1010 = vpow2.f32 %v919_v21 }
  0xfa   : > { %v550_v23 = vpop.f32.mrf.mxu0 }
  0xfb   : > { %v920_v24 = vmul.f32 -1.442695, %v550_v23 }
  0xfc   : > { %v552_v25 = vpop.f32.mrf.mxu0 }
  0xfd   : > { %1012 = vpow2.f32 %v920_v24 }
  0xfe   : > { %v556_v26 = vpop.f32.mrf.mxu0 }
  0xff   : > { %v921_v27 = vmul.f32 -1.442695, %v556_v26 }
 0x100   : > { %v558_v28 = vpop.f32.mrf.mxu0 }
 0x101   : > { %1014 = vpow2.f32 %v921_v27 }
 0x102   : > { %v560_v29 = vpop.f32.mrf.mxu0 }
 0x103   : > { %v922_v30 = vmul.f32 -1.442695, %v560_v29 }
 0x104   : > { %v562_v56 = vpop.f32.mrf.mxu0 }
 0x105   : > { %1016 = vpow2.f32 %v922_v30 }
 0x106   : > { %v1011_v31 = vpop.eup %1010 }
 0x107   : > { %v577_v32 = vadd.f32 1.0, %v1011_v31 }
 0x109   : > { %1018 = vrcp.f32 %v577_v32 }
 0x10a   : > { %v1013_v33 = vpop.eup %1012 }
 0x10b   : > { %v578_v34 = vadd.f32 1.0, %v1013_v33 }
 0x10d   : > { %1020 = vrcp.f32 %v578_v34 }
 0x10e   : > { %v1015_v35 = vpop.eup %1014 }
 0x10f   : > { %v579_v36 = vadd.f32 1.0, %v1015_v35 }
 0x111   : > { %1022 = vrcp.f32 %v579_v36 }
 0x112   : > { %v1017_v37 = vpop.eup %1016 }
 0x113   : > { %v580_v38 = vadd.f32 1.0, %v1017_v37 }
 0x115   : > { %1024 = vrcp.f32 %v580_v38 }
 0x116   : > { %v1019_v39 = vpop.eup %1018 }
 0x117   : > { %v589_v41 = vmul.f32 %v1019_v39, %v546_v20 }
 0x119   : > { %v593_v43 = vmul.f32 %v589_v41, %v548_v22 }
 0x11a   : > { %v1021_v42 = vpop.eup %1020 }
 0x11b   : > { %v590_v44 = vmul.f32 %v1021_v42, %v550_v23  ;;  %v621_v49 = vmul.f32 %v604_v40, %v593_v43 }
 0x11d   : > { %v594_v46 = vmul.f32 %v590_v44, %v552_v25 }
 0x11e   : > { %v1023_v47 = vpop.eup %1022 }
 0x11f   : > { %v591_v48 = vmul.f32 %v1023_v47, %v556_v26  ;;  %v622_v50 = vmul.f32 %v609_v45, %v594_v46 }
 0x121   : > { %v629_v52 = vpack.c.bf16 %v622_v50, %v621_v49  ;;  %v595_v54 = vmul.f32 %v591_v48, %v558_v28 }
 0x122   : > { %v1025_v53 = vpop.eup %1024 }
 0x123   : > { %v592_v55 = vmul.f32 %v1025_v53, %v560_v29  ;;  %961 = vmatprep.mubr.bf16.mxu1 %v629_v52  ;;  %v623_v59 = vmul.f32 %v614_v51, %v595_v54 }
 0x125   : > { %v596_v57 = vmul.f32 %v592_v55, %v562_v56 }
 0x127   : > { %v624_v60 = vmul.f32 %v619_v58, %v596_v57 }
 0x129   : > { %v630_v61 = vpack.c.bf16 %v624_v60, %v623_v59 }
 0x12b   : > { %962 = vmatmul.mubr.bf16.vlgmr.msra.gmra.mxu1 %v630_v61 }
 0x1eb   : > { %v963_v63 = vpop.f32.mrf.mxu1 }
 0x1ec   : > { %v746_v1 = vadd.f32 %v963_v63, %v627_v62 }
 0x1ed   : > { %v729_v2 = vpop.f32.mrf.mxu1 }
 0x1ee   : > { %750 = vst.msk [vmem:[#allocation2 + $0x10] sm:$0xff] %vm457_vm0, %v746_v1  ;;  %v744_v4 = vadd.f32 %v729_v2, %v625_v0 }
 0x1ef   : > { %v964_v5 = vpop.f32.mrf.mxu1 }
 0x1f0   : > { %748 = vst.msk [vmem:[#allocation2] sm:$0xff] %vm457_vm0, %v744_v4  ;;  %v747_v7 = vadd.f32 %v964_v5, %v628_v3 }
 0x1f1   : > { %v732_v8 = vpop.f32.mrf.mxu1 }
 0x1f2   : > { %751 = vst.msk [vmem:[#allocation2 + $0x18] sm:$0xff] %vm457_vm0, %v747_v7  ;;  %v745_v9 = vadd.f32 %v732_v8, %v626_v6 }
 0x1f4   : > { %749 = vst.msk [vmem:[#allocation2 + $0x8] sm:$0xff] %vm457_vm0, %v745_v9 }
 0x1f5 PF: > { %v757_v12 = vld [vmem:[#allocation2 + $0x10] sm:$0xff] }
 0x1f6   : > { %762 = vst.msk [vmem:[%s1141_s12 + $0x10] sm:$0xff] %vm457_vm0, %v757_v12 }
 0x1f7   : > { %v755_v10 = vld [vmem:[#allocation2] sm:$0xff] }
 0x1f8   : > { %760 = vst.msk [vmem:[%s1141_s12] sm:$0xff] %vm457_vm0, %v755_v10 }
 0x1f9   : > { %v758_v13 = vld [vmem:[#allocation2 + $0x18] sm:$0xff] }
 0x1fa   : > { %763 = vst.msk [vmem:[%s1141_s12 + $0x18] sm:$0xff] %vm457_vm0, %v758_v13 }
 0x1fb   : > { %v756_v11 = vld [vmem:[#allocation2 + $0x8] sm:$0xff] }
 0x1fc   : > { %761 = vst.msk [vmem:[%s1141_s12 + $0x8] sm:$0xff] %vm457_vm0, %v756_v11 }
 0x1fd PF: > { %s23_s29 = sadd.s32 1, %s1062_s29   ;;  %s1202_s28 = smov %s1058_s0 }
 0x1fe   : > { %p20_p1 = scmp.ge.s32.totalorder %s23_s29, 12   ;;  %s1203_s0 = smov %s1205_s1 }
 0x200   :  { %22 = sbr.rel (!%p20_p1) target bundleno = 17 (0x11), region = 87 }

</bundles_post_ra>
